<compile_context>
chip_gen: v6e
topology: v6e:2x2x1
jax: 0.10.0
libtpu: 0.0.40
codegen_flags: <defaults>
</compile_context>

<pallas_src>
import functools

import numpy as np
import jax
import jax.numpy as jnp
from jax.experimental import pallas as pl
from jax.experimental.pallas import tpu as pltpu

_LANE = 128
_SUBSLAB = 256  # row chunk for the in-kernel f32 -> 3x bf16 split


def _ceil_to(v, m):
    return -(-v // m) * m


def _vmem_budgets():
    """(per-step tile budget, vmem_limit_bytes) sized to this chip's VMEM."""
    cap = None
    try:
        cap = getattr(pltpu.get_tpu_info(), "vmem_capacity_bytes", None)
    except Exception:
        cap = None
    if cap is None:
        cap = 64 * 1024 * 1024  # conservative default (v7x-sized)
    if cap >= 100 * 1024 * 1024:  # v5e / v6e: 128 MiB physical VMEM
        return 64 * 1024 * 1024, 100 * 1024 * 1024
    return 24 * 1024 * 1024, 48 * 1024 * 1024  # v7x: 64 MiB physical VMEM


def _even_steps_tm(M, tm):
    """Shrink tm (alignment preserving) so the grid step count is even (2 TCs)."""
    steps = -(-M // tm)
    if steps <= 1 or steps % 2 == 0:
        return tm
    target = steps + 1
    for align in (256, 128, 8):
        if align > tm:
            continue
        cand = min(tm, max(align, _ceil_to(-(-M // target), align)))
        if (-(-M // cand)) % 2 == 0:
            return cand
    return tm


def _choose_tm(M, W, n_out, in_itemsize, out_itemsize, budget):
    """Pick the row tile from a per-step VMEM budget."""
    per_row = 2 * W * in_itemsize + 2 * n_out * out_itemsize  # 2x-buffered tiles
    fixed = 2 * W * n_out * 2                                  # resident bf16 S (2 bufs)
    # f32-split temporaries only live over a _SUBSLAB-row chunk:
    fixed += _SUBSLAB * (W * 4 + 3 * W * 2 + n_out * 4)
    tm = max(8, (budget - fixed) // max(per_row, 1))
    tm = int(min(tm, 1024))  # >1024 rows gains little (~85% of HBM roofline)
    if tm >= 256:
        tm = (tm // 256) * 256
    elif tm >= 128:
        tm = 128
    else:
        tm = max(8, (tm // 8) * 8)
    if M <= tm:
        # Whole array fits in one tile; still split in two when big enough so
        # the "parallel" grid axis can shard across v7x's two TensorCores.
        if M >= 512 and M % 16 == 0:
            return M // 2
        return M
    return _even_steps_tm(M, tm)


def _make_kernel(tm, in_dtype, out_dtype, f32_passes):
    """o = x @ S : bit-exact (for finite f32) column selection on the MXU."""
    is_bf16 = jnp.dtype(in_dtype) == jnp.dtype(jnp.bfloat16)
    use_chunks = (tm > _SUBSLAB) and (tm % _SUBSLAB == 0)

    def split_dot(x, s):
        # S is 0/1 (exact in bf16); hi+mid+lo == x exactly (8+8+8 >= 24
        # mantissa bits) and each S column has a single nonzero, so the f32
        # MXU accumulator reconstructs every selected value exactly.
        hi = x.astype(jnp.bfloat16)
        acc = jnp.dot(hi, s, preferred_element_type=jnp.float32)
        if f32_passes >= 2:
            r1 = x - hi.astype(jnp.float32)
            mid = r1.astype(jnp.bfloat16)
            acc = acc + jnp.dot(mid, s, preferred_element_type=jnp.float32)
            if f32_passes >= 3:
                lo = (r1 - mid.astype(jnp.float32)).astype(jnp.bfloat16)
                acc = acc + jnp.dot(lo, s, preferred_element_type=jnp.float32)
        return acc

    def kernel(x_ref, s_ref, o_ref):
        s = s_ref[...]
        if is_bf16:
            o_ref[...] = jnp.dot(
                x_ref[...], s, preferred_element_type=jnp.float32
            ).astype(out_dtype)
            return
        if not use_chunks:
            o_ref[...] = split_dot(
                x_ref[...].astype(jnp.float32), s).astype(out_dtype)
            return

        # Chunk the split + matmuls over row sub-slabs so the f32/bf16
        # temporaries stay at _SUBSLAB rows (bounded live ranges, less VMEM).
        def body(i, carry):
            r0 = pl.multiple_of(i * _SUBSLAB, _SUBSLAB)
            x = x_ref[pl.ds(r0, _SUBSLAB), :].astype(jnp.float32)
            o_ref[pl.ds(r0, _SUBSLAB), :] = split_dot(x, s).astype(out_dtype)
            return carry

        jax.lax.fori_loop(0, tm // _SUBSLAB, body, 0)

    return kernel


@functools.lru_cache(maxsize=None)
def _build_sampling_fn(shape, dtype_name, idx, f32_passes):
    """Compiled, jitted sampling op for one (shape, dtype, mask, passes) key."""
    nb, nc, Nx, Ny = shape
    dtype = jnp.dtype(dtype_name)
    idx_np = np.asarray(idx, dtype=np.int64)
    n_out = int(idx_np.shape[0])

    if n_out == 0:
        return jax.jit(lambda x: jnp.zeros((nb, nc, Nx, 0), dtype))

    supported = (jnp.dtype(jnp.float32), jnp.dtype(jnp.bfloat16),
                 jnp.dtype(jnp.complex64))
    if dtype not in supported:
        # TODO(synk): no exact MXU path for 64-bit / integer dtypes; use a
        # plain (exact) XLA gather instead of the Pallas kernel.
        take_idx = jnp.asarray(idx_np, dtype=jnp.int32)
        return jax.jit(lambda x: jnp.take(x, take_idx, axis=-1))

    is_complex = jnp.issubdtype(dtype, jnp.complexfloating)
    real_dtype = jnp.dtype(jnp.float32) if is_complex else dtype
    in_itemsize = real_dtype.itemsize
    out_itemsize = in_itemsize

    # Trim the contraction range when the sampled span ends well before Ny
    # (partial-Fourier / offset masks).  W must be 128-aligned or == Ny.
    W = Ny
    if Ny > _LANE:
        w_trim = _ceil_to(int(idx_np.max()) + 1, _LANE)
        if w_trim < Ny:
            W = w_trim

    # 0/1 one-hot selection matrix (exact in bf16) -- jit constant, one upload.
    sel_np = np.zeros((W, n_out), dtype=np.float32)
    sel_np[idx_np, np.arange(n_out)] = 1.0
    sel = jnp.asarray(sel_np, dtype=jnp.bfloat16)

    M = nb * nc * Nx * (2 if is_complex else 1)
    budget, vmem_limit = _vmem_budgets()
    TM = _choose_tm(M, W, n_out, in_itemsize, out_itemsize, budget)
    grid = (pl.cdiv(M, TM),)

    n_passes = 1 if real_dtype == jnp.dtype(jnp.bfloat16) else int(f32_passes)
    cost = pl.CostEstimate(
        flops=2 * n_passes * M * W * n_out,
        transcendentals=0,
        bytes_accessed=(M * W * in_itemsize
                        + W * n_out * sel.dtype.itemsize
                        + M * n_out * out_itemsize),
    )

    select2d = pl.pallas_call(
        _make_kernel(TM, real_dtype, real_dtype, int(f32_passes)),
        # Unpadded output straight from the kernel: last block dim equals the
        # full array dim, so no host-side slice / extra HBM pass afterwards.
        out_shape=jax.ShapeDtypeStruct((M, n_out), real_dtype),
        grid_spec=pltpu.PrefetchScalarGridSpec(
            num_scalar_prefetch=0,
            grid=grid,
            in_specs=[
                # Reads only columns [0, W) of each row tile.
                pl.BlockSpec((TM, W), lambda i: (i, 0)),
                # S is grid-invariant (constant index_map): never re-fetched.
                pl.BlockSpec((W, n_out), lambda i: (0, 0)),
            ],
            out_specs=pl.BlockSpec((TM, n_out), lambda i: (i, 0)),
        ),
        compiler_params=pltpu.CompilerParams(
            # Single parallel axis; grid step count is kept even so v7x's two
            # TensorCores split the work evenly.
            dimension_semantics=("parallel",),
            vmem_limit_bytes=vmem_limit,
        ),
        cost_estimate=cost,
    )

    if is_complex:
        def run(x):
            # Fold re/im into the row axis (one fused pass in, one out); keeps
            # the MXU contraction at Ny rather than 2*Ny.
            xr = jnp.stack([jnp.real(x), jnp.imag(x)], axis=-2)  # (nb,nc,Nx,2,Ny)
            out2d = select2d(xr.reshape(M, Ny), sel)
            out = out2d.reshape(nb, nc, Nx, 2, n_out)
            return jax.lax.complex(out[..., 0, :], out[..., 1, :])
    else:
        def run(x):
            out2d = select2d(x.reshape(M, Ny), sel)
            return out2d.reshape(nb, nc, Nx, n_out)

    return jax.jit(run)


def sampling_operator_2d(kspace_data, mask, f32_passes=3):
    """JAX/Pallas equivalent of SamplingOperator2D.forward.

    f32_passes: 3 (default) = bit-exact selection for finite float32 data;
                2 or 1 trade exactness for fewer MXU passes (v5e/v7x).
    """
    if mask is None:
        return kspace_data

    kspace_data = jnp.asarray(kspace_data)
    mask_np = np.asarray(mask)
    line = np.asarray(mask_np[0, 0, :])
    n_sampled = int(abs(float(line.sum())))       # host glue, like .item()
    idx = np.flatnonzero(line != 0)
    assert idx.shape[0] == n_sampled, "mask must be 0/1 over the line axis"

    f32_passes = int(min(3, max(1, f32_passes)))
    fn = _build_sampling_fn(
        tuple(int(d) for d in kspace_data.shape),
        jnp.dtype(kspace_data.dtype).name,
        tuple(int(i) for i in idx),
        f32_passes,
    )
    return fn(kspace_data)


if __name__ == "__main__":
    key = jax.random.PRNGKey(0)

    # --- small float32 case (matches the module's typical NCHW k-space) ----
    nb, nc, Nx, Ny = 2, 4, 16, 16
    kspace = jax.random.normal(key, (nb, nc, Nx, Ny), dtype=jnp.float32)

    mask = np.zeros((1, 1, Ny), dtype=np.float32)
    mask[0, 0, ::2] = 1.0                       # keep every other line
    idx = np.flatnonzero(mask[0, 0, :] != 0)
    idx_dev = jnp.asarray(idx)

    out = jax.block_until_ready(sampling_operator_2d(kspace, mask))
    ref = jnp.take(kspace, idx_dev, axis=-1)
    assert out.shape == (nb, nc, Nx, idx.shape[0])
    np.testing.assert_allclose(np.asarray(out), np.asarray(ref),
                               rtol=1e-6, atol=1e-6)
    # second call hits the memoized jitted function (no rebuild / re-upload)
    out_again = jax.block_until_ready(sampling_operator_2d(kspace, mask))
    np.testing.assert_allclose(np.asarray(out_again), np.asarray(ref),
                               rtol=1e-6, atol=1e-6)

    # --- bfloat16 path (single MXU pass) -----------------------------------
    kspace_bf = kspace.astype(jnp.bfloat16)
    out_bf = jax.block_until_ready(sampling_operator_2d(kspace_bf, mask))
    ref_bf = jnp.take(kspace_bf, idx_dev, axis=-1)
    np.testing.assert_allclose(np.asarray(out_bf, dtype=np.float32),
                               np.asarray(ref_bf, dtype=np.float32),
                               rtol=0, atol=0)

    # --- complex64 path (re/im folded into rows) ---------------------------
    kspace_c = kspace + 1j * jax.random.normal(
        jax.random.PRNGKey(1), (nb, nc, Nx, Ny), dtype=jnp.float32)
    out_c = jax.block_until_ready(sampling_operator_2d(kspace_c, mask))
    ref_c = jnp.take(kspace_c, idx_dev, axis=-1)
    np.testing.assert_allclose(np.asarray(out_c), np.asarray(ref_c),
                               rtol=1e-6, atol=1e-6)

    # --- medium case: exercises even 2-step grid, 256-row chunked f32 split,
    #     and the 128-aligned column-span trim ------------------------------
    nb2, nc2, Nx2, Ny2 = 2, 2, 256, 384
    kspace2 = jax.random.normal(jax.random.PRNGKey(2),
                                (nb2, nc2, Nx2, Ny2), dtype=jnp.float32)
    mask2 = np.zeros((1, 1, Ny2), dtype=np.float32)
    mask2[0, 0, 0:192:2] = 1.0                  # 96 lines, span < 256 columns
    idx2 = np.flatnonzero(mask2[0, 0, :] != 0)
    out2 = jax.block_until_ready(sampling_operator_2d(kspace2, mask2))
    ref2 = jnp.take(kspace2, jnp.asarray(idx2), axis=-1)
    assert out2.shape == (nb2, nc2, Nx2, idx2.shape[0])
    np.testing.assert_allclose(np.asarray(out2), np.asarray(ref2),
                               rtol=1e-6, atol=1e-6)

    print("KERNEL_OK")
</pallas_src>

<mosaic_0001>
module attributes {stable_mosaic.version = 11 : i64} {
  func.func @kernel(%arg0: i32, %arg1: memref<128x16xf32, #tpu.memory_space<vmem>>, %arg2: memref<16x8xbf16, #tpu.memory_space<vmem>>, %arg3: memref<128x8xf32, #tpu.memory_space<vmem>>) attributes {dimension_semantics = [#tpu.dimension_semantics<parallel>], iteration_bounds = array<i64: 1>, scalar_prefetch = 0 : i64, scratch_operands = 0 : i64, tpu.core_type = #tpu.core_type<tc>, window_params = [{transform_indices = @transform_0, window_bounds = array<i64: 128, 16>}, {pipeline_mode = #tpu.pipeline_mode<synchronous>, transform_indices = @transform_1, window_bounds = array<i64: 16, 8>}, {transform_indices = @transform_2, window_bounds = array<i64: 128, 8>}]} {
    %c0 = arith.constant 0 : index
    %c0_0 = arith.constant 0 : index
    %0 = vector.load %arg2[%c0, %c0_0] : memref<16x8xbf16, #tpu.memory_space<vmem>>, vector<16x8xbf16>
    %c0_1 = arith.constant 0 : index
    %c0_2 = arith.constant 0 : index
    %1 = vector.load %arg1[%c0_1, %c0_2] : memref<128x16xf32, #tpu.memory_space<vmem>>, vector<128x16xf32>
    %2 = arith.truncf %1 : vector<128x16xf32> to vector<128x16xbf16>
    %cst = arith.constant dense<0.000000e+00> : vector<128x8xf32>
    %3 = tpu.matmul %2, %0, %cst {dimension_numbers = #tpu.dot_dimension_numbers<[1], [0], [0], [1], [0, 0, 1, 1], [], []>} : vector<128x16xbf16>, vector<16x8xbf16>, vector<128x8xf32> -> vector<128x8xf32>
    %4 = arith.extf %2 : vector<128x16xbf16> to vector<128x16xf32>
    %5 = arith.subf %1, %4 : vector<128x16xf32>
    %6 = arith.truncf %5 : vector<128x16xf32> to vector<128x16xbf16>
    %cst_3 = arith.constant dense<0.000000e+00> : vector<128x8xf32>
    %7 = tpu.matmul %6, %0, %cst_3 {dimension_numbers = #tpu.dot_dimension_numbers<[1], [0], [0], [1], [0, 0, 1, 1], [], []>} : vector<128x16xbf16>, vector<16x8xbf16>, vector<128x8xf32> -> vector<128x8xf32>
    %8 = arith.addf %3, %7 : vector<128x8xf32>
    %9 = arith.extf %6 : vector<128x16xbf16> to vector<128x16xf32>
    %10 = arith.subf %5, %9 : vector<128x16xf32>
    %11 = arith.truncf %10 : vector<128x16xf32> to vector<128x16xbf16>
    %cst_4 = arith.constant dense<0.000000e+00> : vector<128x8xf32>
    %12 = tpu.matmul %11, %0, %cst_4 {dimension_numbers = #tpu.dot_dimension_numbers<[1], [0], [0], [1], [0, 0, 1, 1], [], []>} : vector<128x16xbf16>, vector<16x8xbf16>, vector<128x8xf32> -> vector<128x8xf32>
    %13 = arith.addf %8, %12 : vector<128x8xf32>
    %c0_5 = arith.constant 0 : index
    %c0_6 = arith.constant 0 : index
    %14 = vector.load %arg3[%c0_5, %c0_6] : memref<128x8xf32, #tpu.memory_space<vmem>>, vector<128x8xf32>
    tpu.vector_store %arg3[%c0_5, %c0_6], %13 {strides = array<i32>} : memref<128x8xf32, #tpu.memory_space<vmem>>, vector<128x8xf32>,
    return
  }
  func.func @transform_0(%arg0: i32) -> (i32, i32) {
    %c0_i32 = arith.constant 0 : i32
    %c0_i32_0 = arith.constant 0 : i32
    return %arg0, %c0_i32 : i32, i32
  }
  func.func @transform_1(%arg0: i32) -> (i32, i32) {
    %c0_i32 = arith.constant 0 : i32
    %c0_i32_0 = arith.constant 0 : i32
    %c0_i32_1 = arith.constant 0 : i32
    return %c0_i32, %c0_i32_0 : i32, i32
  }
  func.func @transform_2(%arg0: i32) -> (i32, i32) {
    %c0_i32 = arith.constant 0 : i32
    %c0_i32_0 = arith.constant 0 : i32
    return %arg0, %c0_i32 : i32, i32
  }
}

</mosaic_0001>

<bundles_post_ra>
// kernel: run.1
= control target key start
LH: loop header
LB: loop body
LE: loop exit
PB: predicated region body
PF: predicated region fallthrough
CT: control target
= control target key end

     0   :  { %7 = vsyncpa [#allocation3], 0  ;;  %s923_s0 = inlined_call_operand.hbm [shape: f32[128,16], index: 0, kind: input, shape index: {}]   ;;  %s924_s1 = inlined_call_operand.hbm [shape: bf16[16,8], index: 1, kind: input, shape index: {}]   ;;  %s925_s2 = inlined_call_operand.vmem [shape: f32[128,8], index: 2, kind: output, shape index: {}]  }
   0x1   :  { %8 = vsyncpa [#allocation5], 0  ;;  %s714_s9 = smov [#allocation2]  }
   0x2   :  { %s14_s10 = sshll.u32 %s714_s9, 4  ;;  %s15_s10 = int_to_ptr.vmem [resolvable:$true] %s14_s10 }
   0x3   :  { %s678_s11 = scalar_lea.vmem %s15_s10, 2048  ;;  %p683_p1 = scmp.lt.s32.totalorder %s15_s10, %s15_s10 }
   0x4   :  { %p679_p0 = scmp.ne.s32.totalorder %s15_s10, %s678_s11  ;;  %p684_p2 = scmp.lt.s32.totalorder %s678_s11, %s678_s11 }
   0x6   :  { %p685_p3 = por %p684_p2, %p683_p1 }
   0x8   :  { %p686_p4 = pnand %p685_p3, %p679_p0 }
   0xa   :  { %689 = shalt.err (!%p686_p4)
}
   0xb   :  { %s715_s12 = smov 128   ;;  %s716_s13 = smov 8  }
   0xc   :  { %20 = dma.hbm_to_vmem [thread:$0]  %s923_s0, 2048, %s15_s10, [#allocation3], %s715_s12, %s715_s12, %s716_s13  }
   0xd   :  { %s717_s16 = smov [#allocation4]  }
   0xe   :  { %s26_s17 = sshll.u32 %s717_s16, 4  ;;  %s27_s17 = int_to_ptr.vmem [resolvable:$true] %s26_s17 }
   0xf   :  { %s698_s18 = scalar_lea.vmem %s27_s17, 128  ;;  %p703_p6 = scmp.lt.s32.totalorder %s27_s17, %s27_s17 }
  0x10   :  { %p699_p5 = scmp.ne.s32.totalorder %s27_s17, %s698_s18  ;;  %p704_p7 = scmp.lt.s32.totalorder %s698_s18, %s698_s18 }
  0x12   :  { %p705_p8 = por %p704_p7, %p703_p6 }
  0x14   :  { %p706_p9 = pnand %p705_p8, %p699_p5 }
  0x16   :  { %709 = shalt.err (!%p706_p9)
}
  0x17   :  { %s718_s19 = smov 64   ;;  %s719_s20 = smov 4  }
  0x18   :  { %32 = dma.hbm_to_vmem [thread:$0]  %s924_s1, 128, %s27_s17, [#allocation5], %s718_s19, %s718_s19, %s719_s20  }
  0x19   :  { %710 = dma.done.wait [#allocation3], 2048  }
  0x1a   :  { %711 = vsyncadd [#allocation3], 4294965248 }
  0x1b   :  { %712 = dma.done.wait [#allocation5], 128  }
  0x1c   :  { %713 = vsyncadd [#allocation5], 4294967168  ;;  %v741_v0 = vld [vmem:[#allocation4] sm:$0xff]   ;;  %v43_v2 = vld [vmem:[#allocation2 + $0x8] sm:$0xff]  ;;  %vm112_vm0 = vcmask 130048   ;;  %vm532_vm1 = vcmask 64512  }
  0x1d   :  { %v42_v1 = vld [vmem:[#allocation2] sm:$0xff]  ;;  %661 = vmatprep.subr.bf16.mxu1 %v741_v0  ;;  %607 = vmatprep.subr.bf16.mxu0 %v741_v0  ;;  %v51_v5 = vld [vmem:[#allocation2 + $0x48] sm:$0xff]  ;;  %v44_v6 = vld [vmem:[#allocation2 + $0x10] sm:$0xff] }
  0x1e   :  { %v50_v3 = vld [vmem:[#allocation2 + $0x40] sm:$0xff]  ;;  %v745_v4 = vpack.c.bf16 %v43_v2, %v42_v1  ;;  %v45_v7 = vld [vmem:[#allocation2 + $0x18] sm:$0xff]  ;;  %662 = vmatpush3.bf16.msra.mxu1 %v741_v0  ;;  %608 = vmatpush3.bf16.msra.mxu0 %v741_v0  ;;  %v52_v10 = vld [vmem:[#allocation2 + $0x50] sm:$0xff] }
  0x1f   :  { %v749_v8 = vpack.c.bf16 %v51_v5, %v50_v3  ;;  %v751_v9 = vpack.c.bf16 %v45_v7, %v44_v6  ;;  %v53_v11 = vld [vmem:[#allocation2 + $0x58] sm:$0xff]  ;;  %625 = vmatprep.subr.bf16.mxu1 %v741_v0  ;;  %643 = vmatprep.subr.bf16.mxu0 %v741_v0  ;;  %v46_v19 = vld [vmem:[#allocation2 + $0x20] sm:$0xff]  ;;  %v47_v20 = vld [vmem:[#allocation2 + $0x28] sm:$0xff] }
  0x20   :  { %v66_v12 = vunpack.c.l.bf16 %v745_v4  ;;  %v67_v13 = vunpack.c.h.bf16 %v745_v4  ;;  %v756_v14 = vpack.c.bf16 %v53_v11, %v52_v10  ;;  %v54_v21 = vld [vmem:[#allocation2 + $0x60] sm:$0xff]  ;;  %v55_v26 = vld [vmem:[#allocation2 + $0x68] sm:$0xff]  ;;  %v48_v27 = vld [vmem:[#allocation2 + $0x30] sm:$0xff]  ;;  %v773_v36 = vpack.c.bf16 %v47_v20, %v46_v19 }
  0x21   :  { %v74_v15 = vunpack.c.l.bf16 %v749_v8  ;;  %v75_v16 = vunpack.c.h.bf16 %v749_v8  ;;  %v68_v17 = vunpack.c.l.bf16 %v751_v9  ;;  %v69_v18 = vunpack.c.h.bf16 %v751_v9  ;;  %v49_v28 = vld [vmem:[#allocation2 + $0x38] sm:$0xff]  ;;  %v56_v47 = vld [vmem:[#allocation2 + $0x70] sm:$0xff] }
  0x22   :  { %v82_v22 = vsub.f32 %v42_v1, %v66_v12  ;;  %v83_v23 = vsub.f32 %v43_v2, %v67_v13  ;;  %v76_v24 = vunpack.c.l.bf16 %v756_v14  ;;  %v77_v25 = vunpack.c.h.bf16 %v756_v14  ;;  %v57_v48 = vld [vmem:[#allocation2 + $0x78] sm:$0xff] }
  0x23   :  { %v765_v29 = vsub.f32 %v50_v3, %v74_v15  ;;  %v767_v30 = vsub.f32 %v51_v5, %v75_v16  ;;  %v84_v31 = vsub.f32 %v44_v6, %v68_v17  ;;  %v85_v32 = vsub.f32 %v45_v7, %v69_v18 }
  0x24   :  { %v98_v33 = vpack.c.bf16 %v83_v23, %v82_v22  ;;  %v769_v34 = vsub.f32 %v52_v10, %v76_v24  ;;  %v771_v35 = vsub.f32 %v53_v11, %v77_v25  ;;  %v779_v39 = vpack.c.bf16 %v55_v26, %v54_v21 }
  0x25   :  { %v777_v37 = vpack.c.bf16 %v767_v30, %v765_v29  ;;  %v99_v38 = vpack.c.bf16 %v85_v32, %v84_v31  ;;  %v781_v40 = vpack.c.bf16 %v49_v28, %v48_v27  ;;  %v70_v44 = vunpack.c.l.bf16 %v773_v36 }
  0x26   :  { %609 = vmatprep.mubr.msk.bf16.mxu0 %vm112_vm0, %v98_v33  ;;  %v355_v41 = vunpack.c.l.bf16 %v98_v33  ;;  %v356_v42 = vunpack.c.h.bf16 %v98_v33  ;;  %v786_v43 = vpack.c.bf16 %v771_v35, %v769_v34  ;;  %v71_v45 = vunpack.c.h.bf16 %v773_v36 }
  0x27   :  { %617 = vmatprep.mubr.msk.bf16.mxu1 %vm112_vm0, %v777_v37  ;;  %610 = vmatmul.mubr.msk.bf16.vlgmr.msra.gmra.mxu0 %vm112_vm0, %v99_v38  ;;  %v86_v46 = vsub.f32 %v46_v19, %v70_v44  ;;  %v78_v52 = vunpack.c.l.bf16 %v779_v39  ;;  %v79_v53 = vunpack.c.h.bf16 %v779_v39  ;;  %v72_v54 = vunpack.c.l.bf16 %v781_v40 }
  0x28   :  { %618 = vmatmul.mubr.msk.bf16.vlgmr.msra.gmra.mxu1 %vm112_vm0, %v786_v43  ;;  %644 = vmatpush3.bf16.msra.mxu0 %v741_v0  ;;  %v371_v49 = vsub.f32 %v82_v22, %v355_v41  ;;  %v372_v50 = vsub.f32 %v83_v23, %v356_v42  ;;  %v87_v51 = vsub.f32 %v47_v20, %v71_v45  ;;  %v357_v55 = vunpack.c.l.bf16 %v99_v38 }
  0x29   :  { %626 = vmatpush3.bf16.msra.mxu1 %v741_v0  ;;  %v73_v56 = vunpack.c.h.bf16 %v781_v40  ;;  %v801_v57 = vpack.c.bf16 %v57_v48, %v56_v47  ;;  %v94_v59 = vsub.f32 %v54_v21, %v78_v52  ;;  %v95_v60 = vsub.f32 %v55_v26, %v79_v53 }
  0x2a   :  { %v100_v58 = vpack.c.bf16 %v87_v51, %v86_v46  ;;  %v88_v61 = vsub.f32 %v48_v27, %v72_v54  ;;  %v358_v62 = vunpack.c.h.bf16 %v99_v38  ;;  %v387_v3 = vpack.c.bf16 %v372_v50, %v371_v49 }
  0x2b   :  { %v89_v63 = vsub.f32 %v49_v28, %v73_v56  ;;  %v80_v0 = vunpack.c.l.bf16 %v801_v57  ;;  %v81_v1 = vunpack.c.h.bf16 %v801_v57  ;;  %v104_v2 = vpack.c.bf16 %v95_v60, %v94_v59 }
  0x2c   :  { %613 = vmatprep.mubr.msk.bf16.mxu0 %vm112_vm0, %v100_v58  ;;  %v359_v5 = vunpack.c.l.bf16 %v100_v58  ;;  %v360_v6 = vunpack.c.h.bf16 %v100_v58  ;;  %v373_v12 = vsub.f32 %v84_v31, %v357_v55  ;;  %v374_v13 = vsub.f32 %v85_v32, %v358_v62 }
  0x2d   :  { %v101_v7 = vpack.c.bf16 %v89_v63, %v88_v61  ;;  %v96_v10 = vsub.f32 %v56_v47, %v80_v0  ;;  %v97_v11 = vsub.f32 %v57_v48, %v81_v1  ;;  %621 = vmatprep.mubr.msk.bf16.mxu1 %vm112_vm0, %v104_v2  ;;  %v363_v21 = vunpack.c.l.bf16 %v777_v37 }
  0x2e   :  { %v375_v16 = vsub.f32 %v86_v46, %v359_v5  ;;  %v376_v17 = vsub.f32 %v87_v51, %v360_v6  ;;  %v388_v18 = vpack.c.bf16 %v374_v13, %v373_v12  ;;  %v364_v22 = vunpack.c.h.bf16 %v777_v37 }
  0x2f   :  { %614 = vmatmul.mubr.msk.bf16.gmra.mxu0 %vm112_vm0, %v101_v7  ;;  %v105_v15 = vpack.c.bf16 %v97_v11, %v96_v10  ;;  %v361_v19 = vunpack.c.l.bf16 %v101_v7  ;;  %v362_v20 = vunpack.c.h.bf16 %v101_v7  ;;  %v379_v26 = vsub.f32 %v765_v29, %v363_v21 }
  0x30   :  { %645 = vmatprep.mubr.msk.bf16.mxu0 %vm112_vm0, %v387_v3  ;;  %v389_v23 = vpack.c.bf16 %v376_v17, %v375_v16  ;;  %v380_v27 = vsub.f32 %v767_v30, %v364_v22  ;;  %v365_v28 = vunpack.c.l.bf16 %v786_v43  ;;  %v366_v31 = vunpack.c.h.bf16 %v786_v43 }
  0x31   :  { %622 = vmatmul.mubr.msk.bf16.gmra.mxu1 %vm112_vm0, %v105_v15  ;;  %v377_v24 = vsub.f32 %v88_v61, %v361_v19  ;;  %v378_v25 = vsub.f32 %v89_v63, %v362_v20  ;;  %v367_v33 = vunpack.c.l.bf16 %v104_v2  ;;  %v368_v37 = vunpack.c.h.bf16 %v104_v2 }
  0x32   :  { %627 = vmatprep.mubr.msk.bf16.mxu1 %vm112_vm0, %v745_v4  ;;  %v391_v32 = vpack.c.bf16 %v380_v27, %v379_v26  ;;  %v381_v29 = vsub.f32 %v769_v34, %v365_v28  ;;  %v382_v30 = vsub.f32 %v771_v35, %v366_v31  ;;  %v369_v41 = vunpack.c.l.bf16 %v105_v15 }
  0x33   :  { %v390_v4 = vpack.c.bf16 %v378_v25, %v377_v24  ;;  %v384_v38 = vsub.f32 %v95_v60, %v368_v37  ;;  %v370_v42 = vunpack.c.h.bf16 %v105_v15 }
  0x34   :  { %v385_v44 = vsub.f32 %v96_v10, %v369_v41 }
  0x35   :  { %v386_v34 = vsub.f32 %v97_v11, %v370_v42 }
  0x37   :  { %646 = vmatmul.mubr.msk.bf16.vlgmr.msra.gmra.mxu0 %vm112_vm0, %v388_v18  ;;  %v394_v35 = vpack.c.bf16 %v386_v34, %v385_v44 }
  0x38   :  { %649 = vmatprep.mubr.msk.bf16.mxu0 %vm112_vm0, %v389_v23 }
  0x39   :  { %628 = vmatmul.mubr.msk.bf16.vlgmr.msra.gmra.mxu1 %vm112_vm0, %v751_v9  ;;  %v383_v9 = vsub.f32 %v94_v59, %v367_v33 }
  0x3a   :  { %631 = vmatprep.mubr.msk.bf16.mxu1 %vm112_vm0, %v773_v36  ;;  %v392_v36 = vpack.c.bf16 %v382_v30, %v381_v29 }
  0x3b   :  { %v393_v43 = vpack.c.bf16 %v384_v38, %v383_v9 }
  0x3f   :  { %650 = vmatmul.mubr.msk.bf16.gmra.mxu0 %vm112_vm0, %v390_v4 }
  0x40   :  { %653 = vmatprep.mubr.msk.bf16.mxu0 %vm112_vm0, %v391_v32 }
  0x41   :  { %632 = vmatmul.mubr.msk.bf16.gmra.mxu1 %vm112_vm0, %v781_v40 }
  0x42   :  { %635 = vmatprep.mubr.msk.bf16.mxu1 %vm112_vm0, %v749_v8 }
  0x47   :  { %654 = vmatmul.mubr.msk.bf16.gmra.mxu0 %vm112_vm0, %v392_v36 }
  0x48   :  { %657 = vmatprep.mubr.msk.bf16.mxu0 %vm112_vm0, %v393_v43 }
  0x49   :  { %636 = vmatmul.mubr.msk.bf16.gmra.mxu1 %vm112_vm0, %v756_v14 }
  0x4a   :  { %639 = vmatprep.mubr.msk.bf16.mxu1 %vm112_vm0, %v779_v39 }
  0x4f   :  { %658 = vmatmul.mubr.msk.bf16.gmra.mxu0 %vm112_vm0, %v394_v35 }
  0x51   :  { %640 = vmatmul.mubr.msk.bf16.gmra.mxu1 %vm112_vm0, %v801_v57 }
  0xe7   :  { %v611_v8 = vpop.f32.mrf.mxu0 }
  0xe8   :  { %v619_v40 = vpop.f32.mrf.mxu1 }
  0xe9   :  { %v171_v45 = vpop.f32.mrf.mxu0 }
  0xea   :  { %v203_v46 = vpop.f32.mrf.mxu1 }
  0xeb   :  { %v612_v47 = vpop.f32.mrf.mxu0 }
  0xec   :  { %v841_v48 = vpop.f32.mrf.mxu1 }
  0xed   :  { %v174_v49 = vpop.f32.mrf.mxu0 }
  0xee   :  { %v843_v50 = vpop.f32.mrf.mxu1 }
  0xef   :  { %v615_v14 = vpop.f32.mrf.mxu0 }
  0xf1   :  { %v845_v51 = vpop.f32.mrf.mxu1  ;;  %v187_v39 = vpop.f32.mrf.mxu0 }
  0xf3   :  { %v847_v52 = vpop.f32.mrf.mxu1  ;;  %v616_v53 = vpop.f32.mrf.mxu0 }
  0xf5   :  { %v849_v54 = vpop.f32.mrf.mxu1  ;;  %v190_v55 = vpop.f32.mrf.mxu0 }
  0xf7   :  { %v851_v56 = vpop.f32.mrf.mxu1  ;;  %v647_v57 = vpop.f32.mrf.mxu0 }
  0xf9   :  { %v629_v58 = vpop.f32.mrf.mxu1  ;;  %v453_v59 = vpop.f32.mrf.mxu0 }
  0xfa   :  { %v301_v60 = vadd.f32 %v629_v58, %v611_v8 }
  0xfb   :  { %v292_v61 = vpop.f32.mrf.mxu1  ;;  %v648_v62 = vpop.f32.mrf.mxu0 }
  0xfc   :  { %v518_v63 = vadd.f32 %v647_v57, %v301_v60  ;;  %v293_v0 = vadd.f32 %v292_v61, %v171_v45 }
  0xfd   :  { %v630_v1 = vpop.f32.mrf.mxu1  ;;  %v456_v2 = vpop.f32.mrf.mxu0 }
  0xfe   :  { %535 = vst.msk [vmem:[%s925_s2 + $0x10] sm:$0xff] %vm532_vm1, %v518_v63  ;;  %v516_v3 = vadd.f32 %v453_v59, %v293_v0  ;;  %v304_v5 = vadd.f32 %v630_v1, %v612_v47 }
  0xff   :  { %v295_v6 = vpop.f32.mrf.mxu1  ;;  %v651_v7 = vpop.f32.mrf.mxu0 }
 0x100   :  { %533 = vst.msk [vmem:[%s925_s2] sm:$0xff] %vm532_vm1, %v516_v3  ;;  %v519_v10 = vadd.f32 %v648_v62, %v304_v5  ;;  %v296_v11 = vadd.f32 %v295_v6, %v174_v49 }
 0x101   :  { %v633_v12 = vpop.f32.mrf.mxu1  ;;  %v469_v13 = vpop.f32.mrf.mxu0 }
 0x102   :  { %536 = vst.msk [vmem:[%s925_s2 + $0x18] sm:$0xff] %vm532_vm1, %v519_v10  ;;  %v517_v15 = vadd.f32 %v456_v2, %v296_v11  ;;  %v317_v16 = vadd.f32 %v633_v12, %v615_v14 }
 0x103   :  { %v308_v17 = vpop.f32.mrf.mxu1  ;;  %v652_v18 = vpop.f32.mrf.mxu0 }
 0x104   :  { %534 = vst.msk [vmem:[%s925_s2 + $0x8] sm:$0xff] %vm532_vm1, %v517_v15  ;;  %v522_v19 = vadd.f32 %v651_v7, %v317_v16  ;;  %v309_v20 = vadd.f32 %v308_v17, %v187_v39 }
 0x105   :  { %v634_v21 = vpop.f32.mrf.mxu1  ;;  %v472_v22 = vpop.f32.mrf.mxu0 }
 0x106   :  { %539 = vst.msk [vmem:[%s925_s2 + $0x30] sm:$0xff] %vm532_vm1, %v522_v19  ;;  %v520_v23 = vadd.f32 %v469_v13, %v309_v20  ;;  %v320_v24 = vadd.f32 %v634_v21, %v616_v53 }
 0x107   :  { %v311_v25 = vpop.f32.mrf.mxu1  ;;  %v655_v26 = vpop.f32.mrf.mxu0 }
 0x108   :  { %537 = vst.msk [vmem:[%s925_s2 + $0x20] sm:$0xff] %vm532_vm1, %v520_v23  ;;  %v523_v27 = vadd.f32 %v652_v18, %v320_v24  ;;  %v312_v4 = vadd.f32 %v311_v25, %v190_v55 }
 0x109   :  { %v637_v28 = vpop.f32.mrf.mxu1  ;;  %v485_v31 = vpop.f32.mrf.mxu0 }
 0x10a   :  { %540 = vst.msk [vmem:[%s925_s2 + $0x38] sm:$0xff] %vm532_vm1, %v523_v27  ;;  %v521_v32 = vadd.f32 %v472_v22, %v312_v4  ;;  %v333_v33 = vadd.f32 %v637_v28, %v619_v40 }
 0x10b   :  { %v324_v37 = vpop.f32.mrf.mxu1  ;;  %v656_v29 = vpop.f32.mrf.mxu0 }
 0x10c   :  { %538 = vst.msk [vmem:[%s925_s2 + $0x28] sm:$0xff] %vm532_vm1, %v521_v32  ;;  %v526_v30 = vadd.f32 %v655_v26, %v333_v33  ;;  %v325_v9 = vadd.f32 %v324_v37, %v203_v46 }
 0x10d   :  { %v638_v38 = vpop.f32.mrf.mxu1  ;;  %v488_v36 = vpop.f32.mrf.mxu0 }
 0x10e   :  { %543 = vst.msk [vmem:[%s925_s2 + $0x50] sm:$0xff] %vm532_vm1, %v526_v30  ;;  %v524_v41 = vadd.f32 %v485_v31, %v325_v9  ;;  %v336_v42 = vadd.f32 %v638_v38, %v841_v48 }
 0x10f   :  { %v327_v43 = vpop.f32.mrf.mxu1  ;;  %v659_v44 = vpop.f32.mrf.mxu0 }
 0x110   :  { %541 = vst.msk [vmem:[%s925_s2 + $0x40] sm:$0xff] %vm532_vm1, %v524_v41  ;;  %v527_v34 = vadd.f32 %v656_v29, %v336_v42  ;;  %v328_v35 = vadd.f32 %v327_v43, %v843_v50 }
 0x111   :  { %v641_v8 = vpop.f32.mrf.mxu1  ;;  %v501_v40 = vpop.f32.mrf.mxu0 }
 0x112   :  { %544 = vst.msk [vmem:[%s925_s2 + $0x58] sm:$0xff] %vm532_vm1, %v527_v34  ;;  %v525_v45 = vadd.f32 %v488_v36, %v328_v35  ;;  %v349_v46 = vadd.f32 %v641_v8, %v845_v51 }
 0x113   :  { %v340_v47 = vpop.f32.mrf.mxu1  ;;  %v660_v14 = vpop.f32.mrf.mxu0 }
 0x114   :  { %542 = vst.msk [vmem:[%s925_s2 + $0x48] sm:$0xff] %vm532_vm1, %v525_v45  ;;  %v530_v48 = vadd.f32 %v659_v44, %v349_v46  ;;  %v341_v49 = vadd.f32 %v340_v47, %v847_v52 }
 0x115   :  { %v642_v50 = vpop.f32.mrf.mxu1  ;;  %v504_v52 = vpop.f32.mrf.mxu0 }
 0x116   :  { %547 = vst.msk [vmem:[%s925_s2 + $0x70] sm:$0xff] %vm532_vm1, %v530_v48  ;;  %v528_v39 = vadd.f32 %v501_v40, %v341_v49  ;;  %v352_v53 = vadd.f32 %v642_v50, %v849_v54 }
 0x117   :  { %v343_v51 = vpop.f32.mrf.mxu1 }
 0x118   :  { %545 = vst.msk [vmem:[%s925_s2 + $0x60] sm:$0xff] %vm532_vm1, %v528_v39  ;;  %v531_v55 = vadd.f32 %v660_v14, %v352_v53  ;;  %v344_v57 = vadd.f32 %v343_v51, %v851_v56 }
 0x11a   :  { %548 = vst.msk [vmem:[%s925_s2 + $0x78] sm:$0xff] %vm532_vm1, %v531_v55  ;;  %v529_v58 = vadd.f32 %v504_v52, %v344_v57 }
 0x11c   :  { %546 = vst.msk [vmem:[%s925_s2 + $0x68] sm:$0xff] %vm532_vm1, %v529_v58 }
 0x11d   :  { %553 = vsyncpa [#allocation3], 1 }
 0x11e   :  { %554 = vsyncpa [#allocation5], 1 }

</bundles_post_ra>
